<compile_context>
chip_gen: v7x
topology: tpu7x:2x2x1
jax: 0.10.0
libtpu: 0.0.40
codegen_flags: <defaults>
</compile_context>

<pallas_src>
import functools
import math

import jax
import jax.numpy as jnp
import numpy as np
from jax.experimental import pallas as pl
from jax.experimental.pallas import tpu as pltpu


# ---------------------------------------------------------------------------
# Fused kernel: conv1(3x3,pad1)+lrelu -> conv2(4x4,valid)+lrelu -> fc(1x1)
# Whole batch in one grid step; everything is a single dense matmul per layer.
# ---------------------------------------------------------------------------
def _d0_fused_kernel(a1_ref, w1_ref, b1_ref, w2_ref, b2_ref, w3_ref, b3_ref,
                     o_ref, s_ref, *, slope):
    # a1_ref : (P*N, K1p)  bf16  im2col of MSD-augmented input, rows = p*N + n
    # w1_ref : (K1p, C)    bf16  conv1 weights (K zero-padded to K1p)
    # b1_ref : (1, C)      f32
    # w2_ref : (16*C, C)   bf16  conv2 weights, rows = tap*C + cin (unpadded K)
    # b2_ref : (1, C)      f32
    # w3_ref : (C, CO)     bf16  fc weights (cout padded to CO lanes, col 0 real)
    # b3_ref : (1, CO)     f32
    # o_ref  : (N, CO)     f32
    # s_ref  : (N, 16*C)   f32   VMEM scratch: conv2 input slab
    n, sc = s_ref.shape
    c = w1_ref.shape[1]
    p_total = sc // c                       # 16 conv1 positions == conv2 taps

    # ---- conv1: one deep-M matmul over all (position, batch) rows + LReLU ----
    h1 = jnp.dot(a1_ref[...], w1_ref[...], preferred_element_type=jnp.float32)
    h1 = h1 + b1_ref[...]
    h1 = jnp.maximum(h1, h1 * slope)        # (P*N, C) f32

    # Scatter position blocks into the conv2 input slab:
    #   s[b, p*C:(p+1)*C] = h1[p*N + b, :]   (flattened 4x4xC receptive field)
    for p in range(p_total):
        s_ref[:, p * c:(p + 1) * c] = h1[p * n:(p + 1) * n, :]

    # ---- conv2: single (N, 16*C) x (16*C, C) matmul (unpadded K) + LReLU -----
    x2 = s_ref[...].astype(jnp.bfloat16)
    h2 = jnp.dot(x2, w2_ref[...], preferred_element_type=jnp.float32) + b2_ref[...]
    h2 = jnp.maximum(h2, h2 * slope).astype(jnp.bfloat16)   # (N, C)

    # ---- fc (1x1 conv): (N, C) x (C, CO), lane-dense output store ------------
    o_ref[...] = (jnp.dot(h2, w3_ref[...], preferred_element_type=jnp.float32)
                  + b3_ref[...])


# ---------------------------------------------------------------------------
# One-time weight preparation (hoisted out of the forward pass)
# ---------------------------------------------------------------------------
def prepare_params(params, out_lanes=128):
    c = params["w2"].shape[0]
    w1s = params["w1"] * params["s1"]                 # (C, C+1, 3, 3)
    w2s = params["w2"] * params["s2"]                 # (C, C,   4, 4)
    w3s = params["w3"] * params["s3"]                 # (1, C,   1, 1)

    k1 = 9 * (c + 1)
    k1p = ((k1 + 127) // 128) * 128                   # lane-dense conv1 K

    # conv1: rows = (di*3 + dj)*(C+1) + cin, cols = cout   (matches im2col)
    w1k = jnp.transpose(w1s, (2, 3, 1, 0)).reshape(k1, c)
    w1k = jnp.pad(w1k, ((0, k1p - k1), (0, 0))).astype(jnp.bfloat16)
    # conv2: rows = (di*4 + dj)*C + cin, cols = cout  (K = 16*C, unpadded)
    w2k = jnp.transpose(w2s, (2, 3, 1, 0)).reshape(16 * c, c).astype(jnp.bfloat16)
    # fc: (C, 1) padded to (C, out_lanes); only column 0 is real
    w3k = jnp.pad(w3s[:, :, 0, 0].T, ((0, 0), (0, out_lanes - 1))).astype(jnp.bfloat16)

    b1p = params["b1"].reshape(1, c).astype(jnp.float32)
    b2p = params["b2"].reshape(1, c).astype(jnp.float32)
    b3p = jnp.pad(params["b3"], (0, out_lanes - 1)).reshape(1, out_lanes).astype(jnp.float32)
    return dict(w1k=w1k, b1p=b1p, w2k=w2k, b2p=b2p, w3k=w3k, b3p=b3p)


# ---------------------------------------------------------------------------
# Forward pass wrapper (per-call: MSD scalar + im2col, then one pallas_call)
# ---------------------------------------------------------------------------
def d0_forward(x, prepped):
    """x: (N, C, 4, 4) f32 -> (N, 1, 1, 1) f32."""
    n, c, h, w = x.shape
    assert h == 4 and w == 4, "D_0 is the 4x4 head (conv_2 is a 4x4 valid conv)"
    slope = 0.2

    w1k, b1p = prepped["w1k"], prepped["b1p"]
    w2k, b2p = prepped["w2k"], prepped["b2p"]
    w3k, b3p = prepped["w3k"], prepped["b3p"]
    k1p = w1k.shape[0]
    co = w3k.shape[1]

    # ---- MinibatchStdDev scalar (tiny batch reduction, pure JAX) ------------
    mu = jnp.mean(x, axis=0, keepdims=True)
    var = jnp.mean((x - mu) ** 2, axis=0)
    msd = jnp.mean(jnp.sqrt(var + 1e-8))

    # ---- im2col for conv1, with the MSD channel appended ---------------------
    xh = jnp.transpose(x, (0, 2, 3, 1))                               # (N,H,W,C)
    xh = jnp.concatenate([xh, jnp.full((n, h, w, 1), msd, x.dtype)], axis=-1)
    xp = jnp.pad(xh, ((0, 0), (1, 1), (1, 1), (0, 0)))                # zero pad=1
    cols = [xp[:, di:di + h, dj:dj + w, :] for di in range(3) for dj in range(3)]
    a1 = jnp.stack(cols, axis=3)                                      # (N,H,W,9,C+1)
    # position-major rows: row = (i*W + j)*N + batch   (matches kernel scatter)
    a1 = jnp.transpose(a1, (1, 2, 0, 3, 4)).reshape(h * w * n, 9 * (c + 1))
    a1 = jnp.pad(a1, ((0, 0), (0, k1p - 9 * (c + 1)))).astype(jnp.bfloat16)
    m1 = h * w * n

    out = pl.pallas_call(
        functools.partial(_d0_fused_kernel, slope=slope),
        out_shape=jax.ShapeDtypeStruct((n, co), jnp.float32),
        grid_spec=pltpu.PrefetchScalarGridSpec(
            num_scalar_prefetch=0,
            grid=(1,),
            in_specs=[
                pl.BlockSpec((m1, k1p), lambda i: (0, 0)),
                pl.BlockSpec((k1p, c), lambda i: (0, 0)),
                pl.BlockSpec((1, c), lambda i: (0, 0)),
                pl.BlockSpec((16 * c, c), lambda i: (0, 0)),
                pl.BlockSpec((1, c), lambda i: (0, 0)),
                pl.BlockSpec((c, co), lambda i: (0, 0)),
                pl.BlockSpec((1, co), lambda i: (0, 0)),
            ],
            out_specs=pl.BlockSpec((n, co), lambda i: (0, 0)),
            scratch_shapes=[pltpu.VMEM((n, 16 * c), jnp.float32)],
        ),
        compiler_params=pltpu.CompilerParams(
            dimension_semantics=("arbitrary",)),
    )(a1, w1k, b1p, w2k, b2p, w3k, b3p)

    # first (real) output channel, 1x1 spatial, back to NCHW
    return out[:, :1].reshape(n, 1, 1, 1)


# ---------------------------------------------------------------------------
# Pure-JAX reference (independent path, for correctness check)
# ---------------------------------------------------------------------------
def _conv_ref(x, w, b, scale, pad):
    y = jax.lax.conv_general_dilated(
        x, w * scale, (1, 1), [(pad, pad), (pad, pad)],
        dimension_numbers=("NCHW", "OIHW", "NCHW"))
    return y + b.reshape(1, -1, 1, 1)


def _ref_forward(x, params):
    mu = jnp.mean(x, axis=0, keepdims=True)
    std = jnp.sqrt(jnp.mean((x - mu) ** 2, axis=0) + 1e-8)
    msd = jnp.mean(std)
    y = jnp.concatenate(
        [x, jnp.full((x.shape[0], 1, x.shape[2], x.shape[3]), msd, x.dtype)], axis=1)
    y = _conv_ref(y, params["w1"], params["b1"], params["s1"], 1)
    y = jnp.where(y >= 0, y, 0.2 * y)
    y = _conv_ref(y, params["w2"], params["b2"], params["s2"], 0)
    y = jnp.where(y >= 0, y, 0.2 * y)
    y = _conv_ref(y, params["w3"], params["b3"], params["s3"], 0)
    return y


# ---------------------------------------------------------------------------
# Parameter setup (deterministic, synthetic — equalized-LR init)
# ---------------------------------------------------------------------------
def init_params(key, in_features):
    k1, k2, k3, k4, k5, k6 = jax.random.split(key, 6)
    c = in_features

    def eq(k, cout, cin, kh, kw, kb):
        w = jax.random.normal(k, (cout, cin, kh, kw), jnp.float32)
        b = 0.1 * jax.random.normal(kb, (cout,), jnp.float32)
        s = math.sqrt(2.0 / (cin * kh * kw))          # equalized-LR scale
        return w, b, jnp.float32(s)

    w1, b1, s1 = eq(k1, c, c + 1, 3, 3, k4)
    w2, b2, s2 = eq(k2, c, c, 4, 4, k5)
    w3, b3, s3 = eq(k3, 1, c, 1, 1, k6)
    return dict(w1=w1, b1=b1, s1=s1, w2=w2, b2=b2, s2=s2, w3=w3, b3=b3, s3=s3)


if __name__ == "__main__":
    in_features = 8
    batch, spatial = 4, 4                 # conv_2 is 4x4 valid -> 1x1 output
    key = jax.random.PRNGKey(0)
    kx, kp = jax.random.split(key)
    x = jax.random.normal(kx, (batch, in_features, spatial, spatial), jnp.float32)
    params = init_params(kp, in_features)

    prepped = prepare_params(params)      # one-time weight relayout / bf16 cast
    fwd = jax.jit(d0_forward)
    out = jax.block_until_ready(fwd(x, prepped))
    assert out.shape == (batch, 1, 1, 1), out.shape

    ref = jax.block_until_ready(jax.jit(_ref_forward)(x, params))
    # bf16 MXU inputs (f32 accumulation) -> ~1e-2 relative error vs f32 reference
    np.testing.assert_allclose(np.asarray(out), np.asarray(ref), rtol=5e-2, atol=5e-2)

    print("KERNEL_OK")
</pallas_src>

<mosaic_0001>
module attributes {stable_mosaic.version = 11 : i64} {
  func.func @_d0_fused_kernel(%arg0: i32, %arg1: memref<64x128xbf16, #tpu.memory_space<vmem>>, %arg2: memref<128x8xbf16, #tpu.memory_space<vmem>>, %arg3: memref<1x8xf32, #tpu.memory_space<vmem>>, %arg4: memref<128x8xbf16, #tpu.memory_space<vmem>>, %arg5: memref<1x8xf32, #tpu.memory_space<vmem>>, %arg6: memref<8x128xbf16, #tpu.memory_space<vmem>>, %arg7: memref<1x128xf32, #tpu.memory_space<vmem>>, %arg8: memref<4x128xf32, #tpu.memory_space<vmem>>, %arg9: memref<4x128xf32, #tpu.memory_space<vmem>>) attributes {dimension_semantics = [#tpu.dimension_semantics<arbitrary>], iteration_bounds = array<i64: 1>, scalar_prefetch = 0 : i64, scratch_operands = 1 : i64, tpu.core_type = #tpu.core_type<tc>, window_params = [{pipeline_mode = #tpu.pipeline_mode<synchronous>, transform_indices = @transform_0, window_bounds = array<i64: 64, 128>}, {pipeline_mode = #tpu.pipeline_mode<synchronous>, transform_indices = @transform_1, window_bounds = array<i64: 128, 8>}, {pipeline_mode = #tpu.pipeline_mode<synchronous>, transform_indices = @transform_2, window_bounds = array<i64: 1, 8>}, {pipeline_mode = #tpu.pipeline_mode<synchronous>, transform_indices = @transform_3, window_bounds = array<i64: 128, 8>}, {pipeline_mode = #tpu.pipeline_mode<synchronous>, transform_indices = @transform_4, window_bounds = array<i64: 1, 8>}, {pipeline_mode = #tpu.pipeline_mode<synchronous>, transform_indices = @transform_5, window_bounds = array<i64: 8, 128>}, {pipeline_mode = #tpu.pipeline_mode<synchronous>, transform_indices = @transform_6, window_bounds = array<i64: 1, 128>}, {pipeline_mode = #tpu.pipeline_mode<synchronous>, transform_indices = @transform_7, window_bounds = array<i64: 4, 128>}]} {
    %c0 = arith.constant 0 : index
    %c0_0 = arith.constant 0 : index
    %0 = vector.load %arg1[%c0, %c0_0] : memref<64x128xbf16, #tpu.memory_space<vmem>>, vector<64x128xbf16>
    %c0_1 = arith.constant 0 : index
    %c0_2 = arith.constant 0 : index
    %1 = vector.load %arg2[%c0_1, %c0_2] : memref<128x8xbf16, #tpu.memory_space<vmem>>, vector<128x8xbf16>
    %cst = arith.constant dense<0.000000e+00> : vector<64x8xf32>
    %2 = tpu.matmul %0, %1, %cst {dimension_numbers = #tpu.dot_dimension_numbers<[1], [0], [0], [1], [0, 0, 1, 1], [], []>} : vector<64x128xbf16>, vector<128x8xbf16>, vector<64x8xf32> -> vector<64x8xf32>
    %c0_3 = arith.constant 0 : index
    %c0_4 = arith.constant 0 : index
    %3 = vector.load %arg3[%c0_3, %c0_4] : memref<1x8xf32, #tpu.memory_space<vmem>>, vector<1x8xf32>
    %4 = vector.broadcast %3 : vector<1x8xf32> to vector<64x8xf32>
    %5 = arith.addf %2, %4 : vector<64x8xf32>
    %cst_5 = arith.constant 2.000000e-01 : f32
    %6 = vector.broadcast %cst_5 : f32 to vector<64x8xf32>
    %7 = arith.mulf %5, %6 : vector<64x8xf32>
    %8 = arith.maximumf %5, %7 : vector<64x8xf32>
    %9 = vector.extract_strided_slice %8 {offsets = [0, 0], sizes = [4, 8], strides = [1, 1]} : vector<64x8xf32> to vector<4x8xf32>
    %c0_6 = arith.constant 0 : index
    %c0_7 = arith.constant 0 : index
    %10 = vector.load %arg9[%c0_6, %c0_7] : memref<4x128xf32, #tpu.memory_space<vmem>>, vector<4x8xf32>
    tpu.vector_store %arg9[%c0_6, %c0_7], %9 {strides = array<i32>} : memref<4x128xf32, #tpu.memory_space<vmem>>, vector<4x8xf32>,
    %11 = vector.extract_strided_slice %8 {offsets = [4, 0], sizes = [4, 8], strides = [1, 1]} : vector<64x8xf32> to vector<4x8xf32>
    %c0_8 = arith.constant 0 : index
    %c8 = arith.constant 8 : index
    %12 = vector.load %arg9[%c0_8, %c8] : memref<4x128xf32, #tpu.memory_space<vmem>>, vector<4x8xf32>
    tpu.vector_store %arg9[%c0_8, %c8], %11 {strides = array<i32>} : memref<4x128xf32, #tpu.memory_space<vmem>>, vector<4x8xf32>,
    %13 = vector.extract_strided_slice %8 {offsets = [8, 0], sizes = [4, 8], strides = [1, 1]} : vector<64x8xf32> to vector<4x8xf32>
    %c0_9 = arith.constant 0 : index
    %c16 = arith.constant 16 : index
    %14 = vector.load %arg9[%c0_9, %c16] : memref<4x128xf32, #tpu.memory_space<vmem>>, vector<4x8xf32>
    tpu.vector_store %arg9[%c0_9, %c16], %13 {strides = array<i32>} : memref<4x128xf32, #tpu.memory_space<vmem>>, vector<4x8xf32>,
    %15 = vector.extract_strided_slice %8 {offsets = [12, 0], sizes = [4, 8], strides = [1, 1]} : vector<64x8xf32> to vector<4x8xf32>
    %c0_10 = arith.constant 0 : index
    %c24 = arith.constant 24 : index
    %16 = vector.load %arg9[%c0_10, %c24] : memref<4x128xf32, #tpu.memory_space<vmem>>, vector<4x8xf32>
    tpu.vector_store %arg9[%c0_10, %c24], %15 {strides = array<i32>} : memref<4x128xf32, #tpu.memory_space<vmem>>, vector<4x8xf32>,
    %17 = vector.extract_strided_slice %8 {offsets = [16, 0], sizes = [4, 8], strides = [1, 1]} : vector<64x8xf32> to vector<4x8xf32>
    %c0_11 = arith.constant 0 : index
    %c32 = arith.constant 32 : index
    %18 = vector.load %arg9[%c0_11, %c32] : memref<4x128xf32, #tpu.memory_space<vmem>>, vector<4x8xf32>
    tpu.vector_store %arg9[%c0_11, %c32], %17 {strides = array<i32>} : memref<4x128xf32, #tpu.memory_space<vmem>>, vector<4x8xf32>,
    %19 = vector.extract_strided_slice %8 {offsets = [20, 0], sizes = [4, 8], strides = [1, 1]} : vector<64x8xf32> to vector<4x8xf32>
    %c0_12 = arith.constant 0 : index
    %c40 = arith.constant 40 : index
    %20 = vector.load %arg9[%c0_12, %c40] : memref<4x128xf32, #tpu.memory_space<vmem>>, vector<4x8xf32>
    tpu.vector_store %arg9[%c0_12, %c40], %19 {strides = array<i32>} : memref<4x128xf32, #tpu.memory_space<vmem>>, vector<4x8xf32>,
    %21 = vector.extract_strided_slice %8 {offsets = [24, 0], sizes = [4, 8], strides = [1, 1]} : vector<64x8xf32> to vector<4x8xf32>
    %c0_13 = arith.constant 0 : index
    %c48 = arith.constant 48 : index
    %22 = vector.load %arg9[%c0_13, %c48] : memref<4x128xf32, #tpu.memory_space<vmem>>, vector<4x8xf32>
    tpu.vector_store %arg9[%c0_13, %c48], %21 {strides = array<i32>} : memref<4x128xf32, #tpu.memory_space<vmem>>, vector<4x8xf32>,
    %23 = vector.extract_strided_slice %8 {offsets = [28, 0], sizes = [4, 8], strides = [1, 1]} : vector<64x8xf32> to vector<4x8xf32>
    %c0_14 = arith.constant 0 : index
    %c56 = arith.constant 56 : index
    %24 = vector.load %arg9[%c0_14, %c56] : memref<4x128xf32, #tpu.memory_space<vmem>>, vector<4x8xf32>
    tpu.vector_store %arg9[%c0_14, %c56], %23 {strides = array<i32>} : memref<4x128xf32, #tpu.memory_space<vmem>>, vector<4x8xf32>,
    %25 = vector.extract_strided_slice %8 {offsets = [32, 0], sizes = [4, 8], strides = [1, 1]} : vector<64x8xf32> to vector<4x8xf32>
    %c0_15 = arith.constant 0 : index
    %c64 = arith.constant 64 : index
    %26 = vector.load %arg9[%c0_15, %c64] : memref<4x128xf32, #tpu.memory_space<vmem>>, vector<4x8xf32>
    tpu.vector_store %arg9[%c0_15, %c64], %25 {strides = array<i32>} : memref<4x128xf32, #tpu.memory_space<vmem>>, vector<4x8xf32>,
    %27 = vector.extract_strided_slice %8 {offsets = [36, 0], sizes = [4, 8], strides = [1, 1]} : vector<64x8xf32> to vector<4x8xf32>
    %c0_16 = arith.constant 0 : index
    %c72 = arith.constant 72 : index
    %28 = vector.load %arg9[%c0_16, %c72] : memref<4x128xf32, #tpu.memory_space<vmem>>, vector<4x8xf32>
    tpu.vector_store %arg9[%c0_16, %c72], %27 {strides = array<i32>} : memref<4x128xf32, #tpu.memory_space<vmem>>, vector<4x8xf32>,
    %29 = vector.extract_strided_slice %8 {offsets = [40, 0], sizes = [4, 8], strides = [1, 1]} : vector<64x8xf32> to vector<4x8xf32>
    %c0_17 = arith.constant 0 : index
    %c80 = arith.constant 80 : index
    %30 = vector.load %arg9[%c0_17, %c80] : memref<4x128xf32, #tpu.memory_space<vmem>>, vector<4x8xf32>
    tpu.vector_store %arg9[%c0_17, %c80], %29 {strides = array<i32>} : memref<4x128xf32, #tpu.memory_space<vmem>>, vector<4x8xf32>,
    %31 = vector.extract_strided_slice %8 {offsets = [44, 0], sizes = [4, 8], strides = [1, 1]} : vector<64x8xf32> to vector<4x8xf32>
    %c0_18 = arith.constant 0 : index
    %c88 = arith.constant 88 : index
    %32 = vector.load %arg9[%c0_18, %c88] : memref<4x128xf32, #tpu.memory_space<vmem>>, vector<4x8xf32>
    tpu.vector_store %arg9[%c0_18, %c88], %31 {strides = array<i32>} : memref<4x128xf32, #tpu.memory_space<vmem>>, vector<4x8xf32>,
    %33 = vector.extract_strided_slice %8 {offsets = [48, 0], sizes = [4, 8], strides = [1, 1]} : vector<64x8xf32> to vector<4x8xf32>
    %c0_19 = arith.constant 0 : index
    %c96 = arith.constant 96 : index
    %34 = vector.load %arg9[%c0_19, %c96] : memref<4x128xf32, #tpu.memory_space<vmem>>, vector<4x8xf32>
    tpu.vector_store %arg9[%c0_19, %c96], %33 {strides = array<i32>} : memref<4x128xf32, #tpu.memory_space<vmem>>, vector<4x8xf32>,
    %35 = vector.extract_strided_slice %8 {offsets = [52, 0], sizes = [4, 8], strides = [1, 1]} : vector<64x8xf32> to vector<4x8xf32>
    %c0_20 = arith.constant 0 : index
    %c104 = arith.constant 104 : index
    %36 = vector.load %arg9[%c0_20, %c104] : memref<4x128xf32, #tpu.memory_space<vmem>>, vector<4x8xf32>
    tpu.vector_store %arg9[%c0_20, %c104], %35 {strides = array<i32>} : memref<4x128xf32, #tpu.memory_space<vmem>>, vector<4x8xf32>,
    %37 = vector.extract_strided_slice %8 {offsets = [56, 0], sizes = [4, 8], strides = [1, 1]} : vector<64x8xf32> to vector<4x8xf32>
    %c0_21 = arith.constant 0 : index
    %c112 = arith.constant 112 : index
    %38 = vector.load %arg9[%c0_21, %c112] : memref<4x128xf32, #tpu.memory_space<vmem>>, vector<4x8xf32>
    tpu.vector_store %arg9[%c0_21, %c112], %37 {strides = array<i32>} : memref<4x128xf32, #tpu.memory_space<vmem>>, vector<4x8xf32>,
    %39 = vector.extract_strided_slice %8 {offsets = [60, 0], sizes = [4, 8], strides = [1, 1]} : vector<64x8xf32> to vector<4x8xf32>
    %c0_22 = arith.constant 0 : index
    %c120 = arith.constant 120 : index
    %40 = vector.load %arg9[%c0_22, %c120] : memref<4x128xf32, #tpu.memory_space<vmem>>, vector<4x8xf32>
    tpu.vector_store %arg9[%c0_22, %c120], %39 {strides = array<i32>} : memref<4x128xf32, #tpu.memory_space<vmem>>, vector<4x8xf32>,
    %c0_23 = arith.constant 0 : index
    %c0_24 = arith.constant 0 : index
    %41 = vector.load %arg9[%c0_23, %c0_24] : memref<4x128xf32, #tpu.memory_space<vmem>>, vector<4x128xf32>
    %42 = arith.truncf %41 : vector<4x128xf32> to vector<4x128xbf16>
    %c0_25 = arith.constant 0 : index
    %c0_26 = arith.constant 0 : index
    %43 = vector.load %arg4[%c0_25, %c0_26] : memref<128x8xbf16, #tpu.memory_space<vmem>>, vector<128x8xbf16>
    %cst_27 = arith.constant dense<0.000000e+00> : vector<4x8xf32>
    %44 = tpu.matmul %42, %43, %cst_27 {dimension_numbers = #tpu.dot_dimension_numbers<[1], [0], [0], [1], [0, 0, 1, 1], [], []>} : vector<4x128xbf16>, vector<128x8xbf16>, vector<4x8xf32> -> vector<4x8xf32>
    %c0_28 = arith.constant 0 : index
    %c0_29 = arith.constant 0 : index
    %45 = vector.load %arg5[%c0_28, %c0_29] : memref<1x8xf32, #tpu.memory_space<vmem>>, vector<1x8xf32>
    %46 = vector.broadcast %45 : vector<1x8xf32> to vector<4x8xf32>
    %47 = arith.addf %44, %46 : vector<4x8xf32>
    %cst_30 = arith.constant 2.000000e-01 : f32
    %48 = vector.broadcast %cst_30 : f32 to vector<4x8xf32>
    %49 = arith.mulf %47, %48 : vector<4x8xf32>
    %50 = arith.maximumf %47, %49 : vector<4x8xf32>
    %51 = arith.truncf %50 : vector<4x8xf32> to vector<4x8xbf16>
    %c0_31 = arith.constant 0 : index
    %c0_32 = arith.constant 0 : index
    %52 = vector.load %arg6[%c0_31, %c0_32] : memref<8x128xbf16, #tpu.memory_space<vmem>>, vector<8x128xbf16>
    %cst_33 = arith.constant dense<0.000000e+00> : vector<4x128xf32>
    %53 = tpu.matmul %51, %52, %cst_33 {dimension_numbers = #tpu.dot_dimension_numbers<[1], [0], [0], [1], [0, 0, 1, 1], [], []>} : vector<4x8xbf16>, vector<8x128xbf16>, vector<4x128xf32> -> vector<4x128xf32>
    %c0_34 = arith.constant 0 : index
    %c0_35 = arith.constant 0 : index
    %54 = vector.load %arg7[%c0_34, %c0_35] : memref<1x128xf32, #tpu.memory_space<vmem>>, vector<1x128xf32>
    %55 = vector.broadcast %54 : vector<1x128xf32> to vector<4x128xf32>
    %56 = arith.addf %53, %55 : vector<4x128xf32>
    %c0_36 = arith.constant 0 : index
    %c0_37 = arith.constant 0 : index
    %57 = vector.load %arg8[%c0_36, %c0_37] : memref<4x128xf32, #tpu.memory_space<vmem>>, vector<4x128xf32>
    tpu.vector_store %arg8[%c0_36, %c0_37], %56 {strides = array<i32>} : memref<4x128xf32, #tpu.memory_space<vmem>>, vector<4x128xf32>,
    return
  }
  func.func @transform_0(%arg0: i32) -> (i32, i32) {
    %c0_i32 = arith.constant 0 : i32
    %c0_i32_0 = arith.constant 0 : i32
    %c0_i32_1 = arith.constant 0 : i32
    return %c0_i32, %c0_i32_0 : i32, i32
  }
  func.func @transform_1(%arg0: i32) -> (i32, i32) {
    %c0_i32 = arith.constant 0 : i32
    %c0_i32_0 = arith.constant 0 : i32
    %c0_i32_1 = arith.constant 0 : i32
    return %c0_i32, %c0_i32_0 : i32, i32
  }
  func.func @transform_2(%arg0: i32) -> (i32, i32) {
    %c0_i32 = arith.constant 0 : i32
    %c0_i32_0 = arith.constant 0 : i32
    %c0_i32_1 = arith.constant 0 : i32
    return %c0_i32, %c0_i32_0 : i32, i32
  }
  func.func @transform_3(%arg0: i32) -> (i32, i32) {
    %c0_i32 = arith.constant 0 : i32
    %c0_i32_0 = arith.constant 0 : i32
    %c0_i32_1 = arith.constant 0 : i32
    return %c0_i32, %c0_i32_0 : i32, i32
  }
  func.func @transform_4(%arg0: i32) -> (i32, i32) {
    %c0_i32 = arith.constant 0 : i32
    %c0_i32_0 = arith.constant 0 : i32
    %c0_i32_1 = arith.constant 0 : i32
    return %c0_i32, %c0_i32_0 : i32, i32
  }
  func.func @transform_5(%arg0: i32) -> (i32, i32) {
    %c0_i32 = arith.constant 0 : i32
    %c0_i32_0 = arith.constant 0 : i32
    %c0_i32_1 = arith.constant 0 : i32
    return %c0_i32, %c0_i32_0 : i32, i32
  }
  func.func @transform_6(%arg0: i32) -> (i32, i32) {
    %c0_i32 = arith.constant 0 : i32
    %c0_i32_0 = arith.constant 0 : i32
    %c0_i32_1 = arith.constant 0 : i32
    return %c0_i32, %c0_i32_0 : i32, i32
  }
  func.func @transform_7(%arg0: i32) -> (i32, i32) {
    %c0_i32 = arith.constant 0 : i32
    %c0_i32_0 = arith.constant 0 : i32
    %c0_i32_1 = arith.constant 0 : i32
    return %c0_i32, %c0_i32_0 : i32, i32
  }
}

</mosaic_0001>

<bundles_post_ra>
// kernel: d0_forward.1
= control target key start
LH: loop header
LB: loop body
LE: loop exit
PB: predicated region body
PF: predicated region fallthrough
CT: control target
= control target key end

     0   :  { %v607_v13 = vmov 0.0   ;;  %vm211_vm0 = vcmask 60416   ;;  %s609_s29 = smov 32   ;;  %s610_s9 = smov 48   ;;  %vm618_vm1 = vmmov 0   ;;  %vm217_vm2 = vcmask 130116   ;;  %s762_s1 = inlined_call_operand.vmem [shape: bf16[128,8], index: 1, kind: input, shape index: {}]   ;;  %s763_s0 = inlined_call_operand.vmem [shape: bf16[64,128], index: 0, kind: input, shape index: {}]   ;;  %s764_s2 = inlined_call_operand.vmem [shape: f32[1,8], index: 2, kind: input, shape index: {}]   ;;  %s765_s3 = inlined_call_operand.vmem [shape: bf16[128,8], index: 3, kind: input, shape index: {}]   ;;  %s766_s5 = inlined_call_operand.vmem [shape: bf16[8,128], index: 5, kind: input, shape index: {}]   ;;  %s767_s4 = inlined_call_operand.vmem [shape: f32[1,8], index: 4, kind: input, shape index: {}]   ;;  %s768_s6 = inlined_call_operand.vmem [shape: f32[1,128], index: 6, kind: input, shape index: {}]   ;;  %s769_s7 = inlined_call_operand.vmem [shape: f32[4,128], index: 7, kind: output, shape index: {}]  }
   0x1   :  { %v587_v0 = vld [vmem:[%s762_s1] sm:$0xff]   ;;  %v588_v1 = vld [vmem:[%s762_s1 + $0x8] sm:$0xff]   ;;  %v589_v2 = vld [vmem:[%s762_s1 + $0x10] sm:$0xff]   ;;  %544 = vmatprep.subr.bf16.mxu1 %v607_v13  ;;  %s611_s10 = smov 8   ;;  %s612_s15 = smov 24   ;;  %560 = vmatprep.mubr.msk.bf16.mxu1 %vm618_vm1, %v607_v13  ;;  %vm223_vm3 = vcmask 191616  }
   0x2   :  { %520 = vmatprep.subr.bf16.mxu0 %v587_v0  ;;  %v590_v3 = vld [vmem:[%s762_s1 + $0x18] sm:$0xff]   ;;  %v595_v4 = vld [vmem:[%s763_s0] sm:$0xff]   ;;  %v592_v6 = vld [vmem:[%s762_s1 + $0x28] sm:$0xff]   ;;  %s613_s16 = smov 56   ;;  %s614_s17 = smov 96   ;;  %vm228_vm4 = vcmask 261316  }
   0x3   :  { %521 = vmatpush3.bf16.msra.mxu0 %v587_v0  ;;  %536 = vmatprep.mubr.bf16.mxu0 %v595_v4  ;;  %v591_v5 = vld [vmem:[%s762_s1 + $0x20] sm:$0xff]   ;;  %v593_v7 = vld [vmem:[%s762_s1 + $0x30] sm:$0xff]   ;;  %v594_v8 = vld [vmem:[%s762_s1 + $0x38] sm:$0xff]   ;;  %s615_s18 = smov 16   ;;  %s616_s23 = smov 64   ;;  %vm234_vm5 = vcmask 322816  }
   0x4   :  { %522 = vmatprep.subr.bf16.mxu0 %v588_v1  ;;  %v596_v9 = vld [vmem:[%s763_s0 + $0x8] sm:$0xff]   ;;  %v597_v10 = vld [vmem:[%s763_s0 + $0x10] sm:$0xff]   ;;  %v598_v11 = vld [vmem:[%s763_s0 + $0x18] sm:$0xff]   ;;  %s617_s24 = smov 104   ;;  %s619_s26 = smov 80   ;;  %vm239_vm6 = vcmask 392516  }
   0x5   :  { %v703_v12 = vld [vmem:[%s764_s2] ss:$0 sm:$0xff]  ;;  %v600_v18 = vld [vmem:[%s765_s3 + $0x8] sm:$0xff]   ;;  %s608_s2 = smov 40   ;;  %v601_v29 = vld [vmem:[%s765_s3 + $0x10] sm:$0xff]   ;;  %s620_s27 = smov 72  }
   0x6   :  { %v599_v14 = vld [vmem:[%s765_s3] sm:$0xff]   ;;  %v602_v38 = vld [vmem:[%s765_s3 + $0x18] sm:$0xff]   ;;  %v604_v45 = vld [vmem:[%s765_s3 + $0x28] sm:$0xff]   ;;  %s621_s28 = smov 112   ;;  %s622_s0 = smov 88   ;;  %vm245_vm7 = vcmask 454016  }
   0x7   :  { %523 = vmatpush3.bf16.msra.mxu0 %v588_v1  ;;  %545 = vmatpush3.bf16.msra.mxu1 %v599_v14  ;;  %v603_v41 = vld [vmem:[%s765_s3 + $0x20] sm:$0xff]   ;;  %v605_v49 = vld [vmem:[%s765_s3 + $0x30] sm:$0xff]   ;;  %v606_v52 = vld [vmem:[%s765_s3 + $0x38] sm:$0xff]   ;;  %vm250_vm8 = vcmask 523716   ;;  %vm256_vm9 = vcmask 585216   ;;  %vm261_vm10 = vcmask 654916  }
   0x8   :  { %524 = vmatprep.subr.bf16.mxu0 %v589_v2  ;;  %546 = vmatprep.subr.bf16.mxu1 %v607_v13  ;;  %vm267_vm11 = vcmask 716416   ;;  %vm272_vm12 = vcmask 786116   ;;  %vm278_vm13 = vcmask 847616   ;;  %vm283_vm14 = vcmask 917316  }
   0x9   :  { %vm289_vm15 = vcmask 978816  }
   0xb   :  { %525 = vmatpush3.bf16.msra.mxu0 %v589_v2  ;;  %547 = vmatpush3.bf16.msra.mxu1 %v600_v18  ;;  %v495_v18 = vld [vmem:[%s768_s6] ss:$0 sm:$0xff] }
   0xc   :  { %526 = vmatprep.subr.bf16.mxu0 %v590_v3  ;;  %548 = vmatprep.subr.bf16.mxu1 %v607_v13 }
   0xf   :  { %527 = vmatpush3.bf16.msra.mxu0 %v590_v3  ;;  %549 = vmatpush3.bf16.msra.mxu1 %v601_v29 }
  0x10   :  { %528 = vmatprep.subr.bf16.mxu0 %v591_v5  ;;  %550 = vmatprep.subr.bf16.mxu1 %v607_v13 }
  0x13   :  { %529 = vmatpush3.bf16.msra.mxu0 %v591_v5  ;;  %551 = vmatpush3.bf16.msra.mxu1 %v602_v38 }
  0x14   :  { %530 = vmatprep.subr.bf16.mxu0 %v592_v6  ;;  %552 = vmatprep.subr.bf16.mxu1 %v607_v13 }
  0x17   :  { %531 = vmatpush3.bf16.msra.mxu0 %v592_v6  ;;  %553 = vmatpush3.bf16.msra.mxu1 %v603_v41 }
  0x18   :  { %532 = vmatprep.subr.bf16.mxu0 %v593_v7  ;;  %554 = vmatprep.subr.bf16.mxu1 %v607_v13 }
  0x1b   :  { %533 = vmatpush3.bf16.msra.mxu0 %v593_v7  ;;  %555 = vmatpush3.bf16.msra.mxu1 %v604_v45  ;;  %v412_v7 = vld [vmem:[%s766_s5] sm:$0xf] }
  0x1c   :  { %534 = vmatprep.subr.bf16.mxu0 %v594_v8  ;;  %556 = vmatprep.subr.bf16.mxu1 %v607_v13 }
  0x1f   :  { %535 = vmatpush3.bf16.msra.mxu0 %v594_v8  ;;  %557 = vmatpush3.bf16.msra.mxu1 %v605_v49 }
  0x20   :  { %558 = vmatprep.subr.bf16.mxu1 %v607_v13 }
  0x22   :  { %537 = vmatmul.mubr.bf16.vlgmr.msra.gmra.mrb[0].mxu0 %v596_v9  ;;  %v486_v9 = vld [vmem:[%s767_s4] ss:$0 sm:$0xff] }
  0x23   :  { %540 = vmatprep.mubr.bf16.mxu0 %v597_v10  ;;  %559 = vmatpush3.bf16.msra.mxu1 %v606_v52 }
  0x24   :  { %564 = vmatprep.subr.bf16.mxu1 %v607_v13 }
  0x2a   :  { %541 = vmatmul.mubr.bf16.gmra.mrb[4].mxu0 %v598_v11 }
  0xf5   :  { %v538_v15 = vpop.f32.mrb[0].mxu0 }
  0xf6   :  { %v173_v16 = vadd.f32 %v538_v15, %v703_v12  ;;  %v164_v17 = vpop.f32.mrb[1].mxu0 }
  0xf7   :  { %v165_v19 = vadd.f32 %v703_v12, %v164_v17  ;;  %v539_v20 = vpop.f32.mrb[2].mxu0 }
  0xf8   :  { %v197_v21 = vmul.f32 0.2, %v173_v16  ;;  %v176_v22 = vadd.f32 %v539_v20, %v703_v12  ;;  %v167_v23 = vpop.f32.mrb[3].mxu0 }
  0xf9   :  { %v195_v24 = vmul.f32 0.2, %v165_v19  ;;  %v168_v26 = vadd.f32 %v703_v12, %v167_v23 }
  0xfa   :  { %v198_v25 = vmul.f32 0.2, %v176_v22  ;;  %v205_v27 = vmax.f32 %v173_v16, %v197_v21 }
  0xfb   :  { %v203_v28 = vmax.f32 %v165_v19, %v195_v24  ;;  %v196_v32 = vmul.f32 0.2, %v168_v26 }
  0xfc   :  { %236 = vrot.lane.b32.xlu0 %v205_v27, %s608_s2  ;;  %231 = vrot.lane.b32.xlu1 %v205_v27, %s609_s29  ;;  %v206_v31 = vmax.f32 %v176_v22, %v198_v25  ;;  %s623_s2 = smov 120  }
  0xfd   :  { %v542_v30 = vpop.f32.mrb[4].mxu0  ;;  %212 = vst.msk [vmem:[#allocation2] sm:$0xf] %vm211_vm0, %v203_v28  ;;  %v204_v39 = vmax.f32 %v168_v26, %v196_v32  ;;  %vm294_vm0 = vcmask 1048516  }
  0xfe   :  { %v189_v33 = vadd.f32 %v542_v30, %v703_v12  ;;  %v180_v34 = vpop.f32.mrb[5].mxu0 }
  0xff   :  { %v543_v35 = vpop.f32.mrb[6].mxu0  ;;  %v181_v40 = vadd.f32 %v703_v12, %v180_v34 }
 0x100   :  { %v201_v36 = vmul.f32 0.2, %v189_v33  ;;  %242 = vrot.lane.b32.xlu1 %v206_v31, %s610_s9  ;;  %214 = vrot.lane.b32.xlu0 %v203_v28, %s611_s10  ;;  %v183_v37 = vpop.f32.mrb[7].mxu0  ;;  %v192_v47 = vadd.f32 %v543_v35, %v703_v12 }
 0x101   :  { %v199_v43 = vmul.f32 0.2, %v181_v40  ;;  %v184_v44 = vadd.f32 %v703_v12, %v183_v37 }
 0x102   :  { %v209_v42 = vmax.f32 %v189_v33, %v201_v36  ;;  %v202_v50 = vmul.f32 0.2, %v192_v47 }
 0x103   :  { %v207_v46 = vmax.f32 %v181_v40, %v199_v43  ;;  %v200_v48 = vmul.f32 0.2, %v184_v44 }
 0x104   :  { %225 = vrot.lane.b32.xlu1 %v204_v39, %s612_s15  ;;  %247 = vrot.lane.b32.xlu0 %v206_v31, %s613_s16  ;;  %v210_v53 = vmax.f32 %v192_v47, %v202_v50 }
 0x105   :  { %v208_v51 = vmax.f32 %v184_v44, %v200_v48 }
 0x108   :  { %275 = vrot.lane.b32.xlu1 %v209_v42, %s614_s17  ;;  %220 = vrot.lane.b32.xlu0 %v204_v39, %s615_s18 }
 0x10c   :  { %253 = vrot.lane.b32.xlu1 %v207_v46, %s616_s23  ;;  %280 = vrot.lane.b32.xlu0 %v209_v42, %s617_s24 }
 0x110   :  { %264 = vrot.lane.b32.xlu1 %v208_v51, %s619_s26  ;;  %258 = vrot.lane.b32.xlu0 %v207_v46, %s620_s27 }
 0x114   :  { %286 = vrot.lane.b32.xlu1 %v210_v53, %s621_s28  ;;  %269 = vrot.lane.b32.xlu0 %v208_v51, %s622_s0 }
 0x118   :  { %291 = vrot.lane.b32.xlu0 %v210_v53, %s623_s2 }
 0x16e   :  { %v237_v54 = vpop.permute.xlu0 %236  ;;  %v232_v55 = vpop.permute.xlu1 %231 }
 0x172   :  { %v243_v56 = vpop.permute.xlu1 %242  ;;  %v215_v57 = vpop.permute.xlu0 %214 }
 0x173   :  { %218 = vst.msk [vmem:[#allocation2 - $0x4] sm:$0xf0] %vm217_vm2, %v215_v57  ;;  %vm424_vm2 = vcmask 1043456  }
 0x174   :  { %v426_v8 = vsel %vm424_vm2, %v412_v7, 0 }
 0x176   :  { %v226_v58 = vpop.permute.xlu1 %225  ;;  %v248_v59 = vpop.permute.xlu0 %247 }
 0x17a   :  { %v276_v60 = vpop.permute.xlu1 %275  ;;  %v221_v61 = vpop.permute.xlu0 %220 }
 0x17b   :  { %224 = vst.msk [vmem:[#allocation2] sm:$0xf] %vm223_vm3, %v221_v61  ;;  %vm420_vm3 = vcmask 64512  }
 0x17c   :  { %229 = vst.msk [vmem:[#allocation2 - $0x4] sm:$0xf0] %vm228_vm4, %v226_v58 }
 0x17d   :  { %235 = vst.msk [vmem:[#allocation2] sm:$0xf] %vm234_vm5, %v232_v55 }
 0x17e   :  { %v254_v62 = vpop.permute.xlu1 %253  ;;  %240 = vst.msk [vmem:[#allocation2 - $0x4] sm:$0xf0] %vm239_vm6, %v237_v54  ;;  %v281_v63 = vpop.permute.xlu0 %280 }
 0x17f   :  { %246 = vst.msk [vmem:[#allocation2] sm:$0xf] %vm245_vm7, %v243_v56 }
 0x180   :  { %251 = vst.msk [vmem:[#allocation2 - $0x4] sm:$0xf0] %vm250_vm8, %v248_v59 }
 0x181   :  { %257 = vst.msk [vmem:[#allocation2] sm:$0xf] %vm256_vm9, %v254_v62 }
 0x182   :  { %v265_v0 = vpop.permute.xlu1 %264  ;;  %v259_v1 = vpop.permute.xlu0 %258 }
 0x183   :  { %262 = vst.msk [vmem:[#allocation2 - $0x4] sm:$0xf0] %vm261_vm10, %v259_v1 }
 0x184   :  { %268 = vst.msk [vmem:[#allocation2] sm:$0xf] %vm267_vm11, %v265_v0 }
 0x186   :  { %v270_v2 = vpop.permute.xlu0 %269  ;;  %v287_v3 = vpop.permute.xlu1 %286 }
 0x187   :  { %273 = vst.msk [vmem:[#allocation2 - $0x4] sm:$0xf0] %vm272_vm12, %v270_v2 }
 0x188   :  { %279 = vst.msk [vmem:[#allocation2] sm:$0xf] %vm278_vm13, %v276_v60 }
 0x189   :  { %284 = vst.msk [vmem:[#allocation2 - $0x4] sm:$0xf0] %vm283_vm14, %v281_v63 }
 0x18a   :  { %v292_v4 = vpop.permute.xlu0 %291  ;;  %290 = vst.msk [vmem:[#allocation2] sm:$0xf] %vm289_vm15, %v287_v3 }
 0x18b   :  { %295 = vst.msk [vmem:[#allocation2 - $0x4] sm:$0xf0] %vm294_vm0, %v292_v4 }
 0x192   :  { %v296_v5 = vld [vmem:[#allocation2] sm:$0xf] }
 0x193   :  { %v297_v6 = vpack.c.bf16 %v296_v5, %v296_v5 }
 0x195   :  { %561 = vmatmul.mubr.bf16.vlgmr.msra.gmra.mrb[0].mxu1 %v297_v6 }
 0x196   :  { %566 = vmatprep.mubr.msk.bf16.mxu1 %vm618_vm1, %v607_v13  ;;  %565 = vmatpush3.bf16.msra.mxu1 %v426_v8 }
 0x268   :  { %v403_v10 = vpop.f32.mrb[0].mxu1 }
 0x269   :  { %v404_v11 = vadd.f32 %v486_v9, %v403_v10  ;;  %v562_v12 = vpop.f32.mrb[1].mxu1 }
 0x26a   :  { %v406_v14 = vpop.f32.mrb[2].mxu1 }
 0x26b   :  { %v409_v15 = vmul.f32 0.2, %v404_v11  ;;  %v563_v16 = vpop.f32.mrb[3].mxu1 }
 0x26d   :  { %v410_v17 = vmax.f32 %v404_v11, %v409_v15 }
 0x26f   :  { %v411_v13 = vpack.c.bf16 %v410_v17, %v410_v17 }
 0x271   :  { %567 = vmatmul.mubr.msk.bf16.vlgmr.msra.gmra.mrb[4].mxu1 %vm420_vm3, %v411_v13 }
 0x344   :  { %v462_v19 = vpop.f32.mrb[4].mxu1 }
 0x345   :  { %v463_v20 = vadd.f32 %v495_v18, %v462_v19  ;;  %v568_v21 = vpop.f32.mrb[5].mxu1 }
 0x346   :  { %v465_v22 = vpop.f32.mrb[6].mxu1 }
 0x347   :  { %468 = vst [vmem:[%s769_s7] sm:$0xf] %v463_v20  ;;  %v569_v23 = vpop.f32.mrb[7].mxu1 }

</bundles_post_ra>
